<compile_context>
chip_gen: v7x
topology: tpu7x:2x2x1
jax: 0.10.0
libtpu: 0.0.40
codegen_flags: <defaults>
</compile_context>

<pallas_src>
import jax
import jax.numpy as jnp
from jax.experimental import pallas as pl
from jax.experimental.pallas import tpu as pltpu


def _ceil_to(v, m):
    return -(-int(v) // m) * m


def _tpu_vmem_and_cores():
    """Per-core VMEM capacity and TensorCore count, with conservative fallbacks
    (64 MiB / 2 cores == v7x) so tile sizing never overshoots on any generation."""
    vmem = 64 * 1024 * 1024
    cores = 2
    try:
        info = pltpu.get_tpu_info()
        vmem = int(getattr(info, "vmem_capacity_bytes", vmem))
        for attr in ("num_cores", "core_count", "num_tensorcores"):
            v = getattr(info, attr, None)
            if v:
                cores = max(1, int(v))
                break
    except Exception:
        pass
    return vmem, cores


def connect_blocks_kernel(x_ref, w_ref, b_ref, o_ref):
    # x_ref: (tile_rows, D) f32  -- original-input rows; cast to bf16 HERE (not in a
    #                               separate XLA pass): saves an activation-sized HBM
    #                               round trip, the cast hides under MXU slack.
    # w_ref: (D, H)         bf16 -- folded weight W_eff (constant across the grid).
    # b_ref: (1, H)         f32  -- folded bias  b_eff.
    # o_ref: (tile_rows, H) f32
    x = x_ref[...].astype(jnp.bfloat16)
    acc = jnp.dot(x, w_ref[...], preferred_element_type=jnp.float32)   # MXU, f32 acc
    o_ref[...] = (acc + b_ref[...]).astype(o_ref.dtype)                # f32 epilogue


def prepare_params(params):
    """One-time parameter preparation (hoisted out of the per-call path).

    Because this ConnectBlocks instantiation holds only Linear layers (no
    nonlinearities between them), the forward collapses exactly into
        out = x @ W_eff + b_eff.
    Folding is done in f32; only the GEMM operand is cast to bf16 (the MXU still
    accumulates in f32).  If a nonlinearity were ever inserted inside a block this
    folding no longer applies and a per-layer multi-GEMM kernel is required.
    """
    f32 = jnp.float32
    w00, w01 = params["w00"].astype(f32), params["w01"].astype(f32)
    w10, w11 = params["w10"].astype(f32), params["w11"].astype(f32)
    p0, p1 = params["p0"].astype(f32), params["p1"].astype(f32)
    b00, b01 = params["b00"].astype(f32), params["b01"].astype(f32)
    b10, b11 = params["b10"].astype(f32), params["b11"].astype(f32)

    w_blk1 = w10 @ w11                                       # (H, H)
    w_eff = (w00 @ w01 + p0) @ w_blk1 + p1                   # (D, H)
    b_eff = (b00 @ w01 + b01) @ w_blk1 + b10 @ w11 + b11     # (1, H)
    # TODO(synk): optional int8 (v5e/v6e) / fp8 (v7x) weight quantization with
    # per-output-channel scales applied in the f32 epilogue (~2x MXU throughput).
    return {"w_eff": w_eff.astype(jnp.bfloat16), "b_eff": b_eff}


def connect_blocks_forward(x, prepared, *, tile_rows=None):
    """x: (B, T, D) float32, prepared: output of prepare_params -> (B, T, H) float32."""
    B, T, D = x.shape
    w_eff, b_eff = prepared["w_eff"], prepared["b_eff"]
    assert w_eff.shape[0] == D, (w_eff.shape, D)
    H = w_eff.shape[1]
    N = B * T
    x2 = x.reshape(N, D)              # contiguous collapse: metadata-only, no copy

    vmem_cap, cores = _tpu_vmem_and_cores()
    # Review guidance: target ~100 MiB on v5e/v6e, ~50 MiB on v7x, with headroom.
    budget = min(int(vmem_cap * 0.80), 100 * 1024 * 1024)

    # Per-step footprint model:
    #   fixed  : W_eff (bf16, 2 pipeline buffers even for a constant index map),
    #            sublane/lane-padded bias, ~2 MiB slack for Mosaic internals.
    #   per row: x tile (f32, double-buffered) + its in-kernel bf16 copy
    #            + out tile (f32, double-buffered) + f32 accumulator.
    fixed = 2 * (D * H * 2) + 2 * (8 * _ceil_to(H, 128) * 4) + (2 << 20)
    per_row = (2 * D * 4) + (D * 2) + (2 * H * 4) + (H * 4)
    tile_cap = max(8, ((budget - fixed) // max(per_row, 1)) // 8 * 8)
    tile_cap = min(tile_cap, 4096)
    # TODO(synk): for very large D,H (>= ~4096) the resident folded weight alone
    # approaches the v7x budget; stream weight panels (emit_pipeline / K-split grid
    # axis with an f32 VMEM accumulator) instead of collapsing tile_cap.

    if tile_rows is None:
        if N <= min(tile_cap, 1024):
            # Tiny problem: a single grid step (no per-step overhead; optimal on the
            # single-TC v5e/v6e, negligible loss on v7x at this size).
            tile_rows = _ceil_to(N, 8)
        else:
            # Large problem: >= 2 steps per TensorCore (>= 4 total on v7x) so each
            # core's x-load / out-writeback pipelines behind compute.
            want = _ceil_to(pl.cdiv(N, 2 * cores), 8)
            tile_rows = min(tile_cap, max(128, want))
    tile_rows = max(8, min(_ceil_to(tile_rows, 8), _ceil_to(N, 8)))
    grid = (pl.cdiv(N, tile_rows),)   # ragged last block is fine: rows past N are
                                      # computed on garbage but never written back

    footprint = fixed + per_row * tile_rows
    vmem_limit = int(min(vmem_cap, max(32 << 20, footprint + (8 << 20))))

    const = lambda i: (0, 0)          # weights/bias: same full block every step
    out = pl.pallas_call(
        connect_blocks_kernel,
        out_shape=jax.ShapeDtypeStruct((N, H), jnp.float32),
        grid_spec=pltpu.PrefetchScalarGridSpec(
            num_scalar_prefetch=0,
            grid=grid,
            in_specs=[
                pl.BlockSpec((tile_rows, D), lambda i: (i, 0)),   # x rows
                pl.BlockSpec((D, H), const),                      # W_eff (resident)
                pl.BlockSpec((1, H), const),                      # b_eff
            ],
            out_specs=pl.BlockSpec((tile_rows, H), lambda i: (i, 0)),
        ),
        compiler_params=pltpu.CompilerParams(
            dimension_semantics=("parallel",),
            vmem_limit_bytes=vmem_limit,
        ),
    )(x2, w_eff, b_eff)

    return out.reshape(B, T, H)       # metadata-only: no post-kernel slice copy


def connect_blocks_reference(x, params):
    """Pure-f32, UNFOLDED reference of the original module semantics (residual
    shortcuts always taken from the original input)."""
    x0 = x
    h = x0 @ params["w00"] + params["b00"]
    h = h @ params["w01"] + params["b01"]
    h = x0 @ params["p0"] + h
    g = h @ params["w10"] + params["b10"]
    g = g @ params["w11"] + params["b11"]
    g = x0 @ params["p1"] + g
    return g


def init_params(key, D, H):
    ks = jax.random.split(key, 8)
    scale_in = 1.0 / jnp.sqrt(D)
    scale_h = 1.0 / jnp.sqrt(H)
    return {
        "w00": jax.random.normal(ks[0], (D, H), jnp.float32) * scale_in,
        "b00": jax.random.normal(ks[1], (1, H), jnp.float32) * 0.1,
        "w01": jax.random.normal(ks[2], (H, H), jnp.float32) * scale_h,
        "b01": jax.random.normal(ks[3], (1, H), jnp.float32) * 0.1,
        "p0":  jax.random.normal(ks[4], (D, H), jnp.float32) * scale_in,
        "w10": jax.random.normal(ks[5], (H, H), jnp.float32) * scale_h,
        "b10": jax.random.normal(ks[6], (1, H), jnp.float32) * 0.1,
        "w11": jax.random.normal(ks[7], (H, H), jnp.float32) * scale_h,
        "b11": jnp.zeros((1, H), jnp.float32),
        "p1":  jax.random.normal(jax.random.fold_in(key, 123), (D, H), jnp.float32) * scale_in,
    }


if __name__ == "__main__":
    key = jax.random.PRNGKey(0)

    # Case 1: small shapes mirroring the module docstring example.
    B, T, D, H = 2, 16, 32, 16
    k_x, k_p = jax.random.split(key)
    x = jax.random.normal(k_x, (B, T, D), jnp.float32)
    params = init_params(k_p, D, H)
    prepared = prepare_params(params)              # one-time weight folding / cast

    out = jax.block_until_ready(connect_blocks_forward(x, prepared))
    ref = connect_blocks_reference(x, params)
    assert out.shape == (B, T, H), out.shape
    err = float(jnp.max(jnp.abs(out - ref)))
    assert jnp.allclose(out, ref, atol=5e-2, rtol=5e-2), f"case1 mismatch: {err}"

    # Case 2 (review's correctness concern): lane-dense feature dims (D=H=128) and a
    # multi-step grid with a ragged last block (N=150, tile_rows=64 -> 3 steps).
    B2, T2, D2, H2 = 3, 50, 128, 128
    k_x2, k_p2 = jax.random.split(jax.random.fold_in(key, 1))
    x_b = jax.random.normal(k_x2, (B2, T2, D2), jnp.float32)
    params_b = init_params(k_p2, D2, H2)
    prepared_b = prepare_params(params_b)

    out_b = jax.block_until_ready(connect_blocks_forward(x_b, prepared_b, tile_rows=64))
    ref_b = connect_blocks_reference(x_b, params_b)
    assert out_b.shape == (B2, T2, H2), out_b.shape
    err_b = float(jnp.max(jnp.abs(out_b - ref_b)))
    assert jnp.allclose(out_b, ref_b, atol=5e-2, rtol=5e-2), f"case2 mismatch: {err_b}"

    print("KERNEL_OK")
</pallas_src>

<mosaic_0001>
module attributes {stable_mosaic.version = 11 : i64} {
  func.func @connect_blocks_kernel(%arg0: i32, %arg1: memref<32x32xf32, #tpu.memory_space<vmem>>, %arg2: memref<32x16xbf16, #tpu.memory_space<vmem>>, %arg3: memref<1x16xf32, #tpu.memory_space<vmem>>, %arg4: memref<32x16xf32, #tpu.memory_space<vmem>>) attributes {dimension_semantics = [#tpu.dimension_semantics<parallel>], iteration_bounds = array<i64: 1>, scalar_prefetch = 0 : i64, scratch_operands = 0 : i64, tpu.core_type = #tpu.core_type<tc>, window_params = [{transform_indices = @transform_0, window_bounds = array<i64: 32, 32>}, {pipeline_mode = #tpu.pipeline_mode<synchronous>, transform_indices = @transform_1, window_bounds = array<i64: 32, 16>}, {pipeline_mode = #tpu.pipeline_mode<synchronous>, transform_indices = @transform_2, window_bounds = array<i64: 1, 16>}, {transform_indices = @transform_3, window_bounds = array<i64: 32, 16>}]} {
    %c0 = arith.constant 0 : index
    %c0_0 = arith.constant 0 : index
    %0 = vector.load %arg1[%c0, %c0_0] : memref<32x32xf32, #tpu.memory_space<vmem>>, vector<32x32xf32>
    %1 = arith.truncf %0 : vector<32x32xf32> to vector<32x32xbf16>
    %c0_1 = arith.constant 0 : index
    %c0_2 = arith.constant 0 : index
    %2 = vector.load %arg2[%c0_1, %c0_2] : memref<32x16xbf16, #tpu.memory_space<vmem>>, vector<32x16xbf16>
    %cst = arith.constant dense<0.000000e+00> : vector<32x16xf32>
    %3 = tpu.matmul %1, %2, %cst {dimension_numbers = #tpu.dot_dimension_numbers<[1], [0], [0], [1], [0, 0, 1, 1], [], []>} : vector<32x32xbf16>, vector<32x16xbf16>, vector<32x16xf32> -> vector<32x16xf32>
    %c0_3 = arith.constant 0 : index
    %c0_4 = arith.constant 0 : index
    %4 = vector.load %arg3[%c0_3, %c0_4] : memref<1x16xf32, #tpu.memory_space<vmem>>, vector<1x16xf32>
    %5 = vector.broadcast %4 : vector<1x16xf32> to vector<32x16xf32>
    %6 = arith.addf %3, %5 : vector<32x16xf32>
    %c0_5 = arith.constant 0 : index
    %c0_6 = arith.constant 0 : index
    %7 = vector.load %arg4[%c0_5, %c0_6] : memref<32x16xf32, #tpu.memory_space<vmem>>, vector<32x16xf32>
    tpu.vector_store %arg4[%c0_5, %c0_6], %6 {strides = array<i32>} : memref<32x16xf32, #tpu.memory_space<vmem>>, vector<32x16xf32>,
    return
  }
  func.func @transform_0(%arg0: i32) -> (i32, i32) {
    %c0_i32 = arith.constant 0 : i32
    %c0_i32_0 = arith.constant 0 : i32
    return %arg0, %c0_i32 : i32, i32
  }
  func.func @transform_1(%arg0: i32) -> (i32, i32) {
    %c0_i32 = arith.constant 0 : i32
    %c0_i32_0 = arith.constant 0 : i32
    %c0_i32_1 = arith.constant 0 : i32
    return %c0_i32, %c0_i32_0 : i32, i32
  }
  func.func @transform_2(%arg0: i32) -> (i32, i32) {
    %c0_i32 = arith.constant 0 : i32
    %c0_i32_0 = arith.constant 0 : i32
    %c0_i32_1 = arith.constant 0 : i32
    return %c0_i32, %c0_i32_0 : i32, i32
  }
  func.func @transform_3(%arg0: i32) -> (i32, i32) {
    %c0_i32 = arith.constant 0 : i32
    %c0_i32_0 = arith.constant 0 : i32
    return %arg0, %c0_i32 : i32, i32
  }
}

</mosaic_0001>

<bundles_post_ra>
// kernel: tpu_custom_call.1
= control target key start
LH: loop header
LB: loop body
LE: loop exit
PB: predicated region body
PF: predicated region fallthrough
CT: control target
= control target key end

     0   :  { %8 = vsyncpa [#allocation3], 0  ;;  %s170_s12 = smov [#allocation2]   ;;  %s226_s0 = inlined_call_operand.hbm [shape: f32[32,32], index: 0, kind: input, shape index: {}]   ;;  %s227_s1 = inlined_call_operand.vmem [shape: bf16[32,16], index: 1, kind: input, shape index: {}]   ;;  %s228_s2 = inlined_call_operand.vmem [shape: f32[1,16], index: 2, kind: input, shape index: {}]   ;;  %s229_s3 = inlined_call_operand.vmem [shape: f32[32,16], index: 3, kind: output, shape index: {}]  }
   0x1   :  { %s14_s13 = sshll.u32 %s170_s12, 4  ;;  %s146_s16 = scalar_lea.hbm %s226_s0, 512  ;;  %s15_s13 = int_to_ptr.vmem [resolvable:$true] %s14_s13 }
   0x2   :  { %p147_p0 = scmp.ne.s32.totalorder %s226_s0, %s146_s16  ;;  %p150_p1 = scmp.lt.u32.totalorder %s146_s16, %s226_s0 }
   0x4   :  { %p152_p2 = pnand %p150_p1, %p147_p0 }
   0x6   :  { %155 = shalt.err (!%p152_p2)
}
   0x7   :  { %s156_s21 = scalar_lea.vmem %s15_s13, 512  ;;  %p161_p4 = scmp.lt.s32.totalorder %s15_s13, %s15_s13 }
   0x8   :  { %p157_p3 = scmp.ne.s32.totalorder %s15_s13, %s156_s21  ;;  %p162_p5 = scmp.lt.s32.totalorder %s156_s21, %s156_s21 }
   0xa   :  { %p163_p6 = por %p162_p5, %p161_p4 }
   0xc   :  { %p164_p7 = pnand %p163_p6, %p157_p3 }
   0xe   :  { %167 = shalt.err (!%p164_p7)
}
   0xf   :  { %s171_s22 = smov 128   ;;  %s172_s23 = smov 8  }
  0x10   :  { %20 = dma.hbm_to_vmem [thread:$0]  %s226_s0, 512, %s15_s13, [#allocation3], %s171_s22, %s171_s22, %s172_s23  }
  0x11   :  { %168 = dma.done.wait [#allocation3], 512  }
  0x12   :  { %169 = vsyncadd [#allocation3], 4294966784  ;;  %v144_v0 = vld [vmem:[%s227_s1] sm:$0xff]   ;;  %v145_v1 = vld [vmem:[%s227_s1 + $0x8] sm:$0xff]   ;;  %vm58_vm0 = vcmask 261120   ;;  %vm114_vm1 = vcmask 130048  }
  0x13   :  { %133 = vmatprep.subr.bf16.mxu0 %v144_v0  ;;  %v29_v2 = vld [vmem:[#allocation2] sm:$0xff]  ;;  %v30_v3 = vld [vmem:[#allocation2 + $0x8] sm:$0xff]  ;;  %v31_v5 = vld [vmem:[#allocation2 + $0x10] sm:$0xff] }
  0x14   :  { %134 = vmatpush3.bf16.msra.mxu0 %v144_v0  ;;  %v33_v4 = vpack.c.bf16 %v30_v3, %v29_v2  ;;  %v32_v6 = vld [vmem:[#allocation2 + $0x18] sm:$0xff]  ;;  %v124_v8 = vld [vmem:[%s228_s2] ss:$0 sm:$0xff] }
  0x15   :  { %135 = vmatprep.subr.bf16.mxu0 %v145_v1  ;;  %v34_v7 = vpack.c.bf16 %v32_v6, %v31_v5 }
  0x16   :  { %137 = vmatprep.mubr.msk.bf16.mxu0 %vm58_vm0, %v33_v4 }
  0x18   :  { %136 = vmatpush3.bf16.msra.mxu0 %v145_v1 }
  0x1b   :  { %138 = vmatmul.mubr.msk.bf16.vlgmr.msra.gmra.mrb[0].mxu0 %vm58_vm0, %v34_v7 }
  0xee   :  { %v139_v9 = vpop.f32.mrb[0].mxu0 }
  0xef   :  { %v108_v10 = vadd.f32 %v139_v9, %v124_v8  ;;  %v99_v11 = vpop.f32.mrb[1].mxu0 }
  0xf0   :  { %v100_v12 = vadd.f32 %v124_v8, %v99_v11  ;;  %v140_v13 = vpop.f32.mrb[2].mxu0 }
  0xf1   :  { %117 = vst.msk [vmem:[%s229_s3 + $0x10] sm:$0xff] %vm114_vm1, %v108_v10  ;;  %v111_v14 = vadd.f32 %v140_v13, %v124_v8  ;;  %v102_v15 = vpop.f32.mrb[3].mxu0 }
  0xf2   :  { %115 = vst.msk [vmem:[%s229_s3] sm:$0xff] %vm114_vm1, %v100_v12  ;;  %v103_v16 = vadd.f32 %v124_v8, %v102_v15 }
  0xf3   :  { %118 = vst.msk [vmem:[%s229_s3 + $0x18] sm:$0xff] %vm114_vm1, %v111_v14 }
  0xf4   :  { %116 = vst.msk [vmem:[%s229_s3 + $0x8] sm:$0xff] %vm114_vm1, %v103_v16 }
  0xf5   :  { %123 = vsyncpa [#allocation3], 1 }

</bundles_post_ra>
